<compile_context>
chip_gen: v7x
topology: tpu7x:2x2x1
jax: 0.10.0
libtpu: 0.0.40
codegen_flags: <defaults>
</compile_context>

<pallas_src>
import jax
import jax.numpy as jnp
import numpy as np
from jax import lax
from jax.experimental import pallas as pl
from jax.experimental.pallas import tpu as pltpu


# ---------------------------------------------------------------------------
# Helpers
# ---------------------------------------------------------------------------
def _pick_tile(dim, target, unit):
    """Largest tile <= target that is a multiple of `unit` and divides `dim`;
    falls back to the full dimension (always a legal block size)."""
    if dim <= target:
        return dim
    t = (target // unit) * unit
    while t >= unit:
        if dim % t == 0:
            return t
        t -= unit
    return dim


def _head_group_width(embed_dim, head_dim):
    """Lane width of one head group: the smallest multiple of head_dim that is
    also a multiple of 128 and divides embed_dim (so every q/k/v/out block is
    128-lane aligned); falls back to the full embedding width."""
    g = head_dim
    while g % 128 != 0 and g < embed_dim:
        g += head_dim
    if g <= embed_dim and g % 128 == 0 and embed_dim % g == 0:
        return g
    return embed_dim


def _bf16_eup_supported():
    """bf16 exp path exists on v6e/v7x; v5e and older have no bf16 VPU/EUP."""
    try:
        kind = jax.devices()[0].device_kind.lower()
    except Exception:
        return False
    for old in ("v2", "v3", "v4", "v5"):
        if old in kind:
            return False
    return True


# ---------------------------------------------------------------------------
# Tiled linear kernels:  out[p] = x @ w[p].T + b[p]   (PyTorch nn.Linear)
# ---------------------------------------------------------------------------
def _linear_kernel_full_k(x_ref, w_ref, b_ref, o_ref):
    # x: (tm, K) bf16, w: (tn, K) bf16 -> contract trailing dims (x @ w.T);
    # transpose folded into MXU operand selection. Single shot: no accumulator.
    acc = lax.dot_general(
        x_ref[...], w_ref[...],
        dimension_numbers=(((1,), (1,)), ((), ())),
        preferred_element_type=jnp.float32)
    o_ref[...] = (acc + b_ref[...]).astype(o_ref.dtype)


def _linear_kernel_acc(x_ref, w_ref, b_ref, o_ref, acc_ref):
    @pl.when(pl.program_id(3) == 0)
    def _():
        acc_ref[...] = jnp.zeros_like(acc_ref)

    acc_ref[...] += lax.dot_general(
        x_ref[...], w_ref[...],
        dimension_numbers=(((1,), (1,)), ((), ())),
        preferred_element_type=jnp.float32)

    @pl.when(pl.program_id(3) == pl.num_programs(3) - 1)
    def _():
        o_ref[...] = (acc_ref[...] + b_ref[...]).astype(o_ref.dtype)


def stacked_linear(x, w_stack, b_stack, out_dtype):
    """x: (M, K) bf16; w_stack: (P, N, K) torch (out,in) layout bf16;
    b_stack: (P, 1, N) f32.  Returns (P, M, N) in out_dtype."""
    M, K = x.shape
    P, N, _ = w_stack.shape
    tm = M if M <= 1024 else _pick_tile(M, 512, 16)   # bf16 packs 16 sublanes
    tn = N if N <= 1024 else _pick_tile(N, 1024, 128)

    if K <= 2048:
        # Full-K GEMM: no K grid axis, no accumulator, bias added in-shot.
        return pl.pallas_call(
            _linear_kernel_full_k,
            out_shape=jax.ShapeDtypeStruct((P, M, N), out_dtype),
            grid=(P, M // tm, N // tn),
            in_specs=[
                pl.BlockSpec((tm, K), lambda p, i, j: (i, 0)),
                pl.BlockSpec((None, tn, K), lambda p, i, j: (p, j, 0)),
                pl.BlockSpec((None, 1, tn), lambda p, i, j: (p, 0, j)),
            ],
            out_specs=pl.BlockSpec((None, tm, tn), lambda p, i, j: (p, i, j)),
            compiler_params=pltpu.CompilerParams(
                dimension_semantics=("parallel", "parallel", "parallel"),
                vmem_limit_bytes=48 * 1024 * 1024),
        )(x, w_stack, b_stack)

    # Fallback for very large K: K-reduction with f32 VMEM accumulator.
    tk = _pick_tile(K, 1024, 128)
    return pl.pallas_call(
        _linear_kernel_acc,
        out_shape=jax.ShapeDtypeStruct((P, M, N), out_dtype),
        grid=(P, M // tm, N // tn, K // tk),
        in_specs=[
            pl.BlockSpec((tm, tk), lambda p, i, j, k: (i, k)),
            pl.BlockSpec((None, tn, tk), lambda p, i, j, k: (p, j, k)),
            pl.BlockSpec((None, 1, tn), lambda p, i, j, k: (p, 0, j)),
        ],
        out_specs=pl.BlockSpec((None, tm, tn), lambda p, i, j, k: (p, i, j)),
        scratch_shapes=[pltpu.VMEM((tm, tn), jnp.float32)],
        compiler_params=pltpu.CompilerParams(
            dimension_semantics=("parallel", "parallel", "parallel", "arbitrary"),
            vmem_limit_bytes=48 * 1024 * 1024),
    )(x, w_stack, b_stack)


# ---------------------------------------------------------------------------
# Attention kernel: grid = (batch, query-tile, head-group).
# Each step handles one 128-lane-aligned head-group slab for one query tile.
# ---------------------------------------------------------------------------
def _make_attn_kernel(heads_per_group, head_dim, has_mask, use_bf16_exp):
    def kernel(*refs):
        if has_mask:
            q_ref, k_ref, v_ref, mask_ref, o_ref, o_acc = refs
        else:
            q_ref, k_ref, v_ref, o_ref, o_acc = refs
            mask_ref = None

        mask = mask_ref[...] if has_mask else None        # (tq, S) f32, once

        for h in range(heads_per_group):                  # tiny static unroll
            lo = h * head_dim
            hi = lo + head_dim
            qh = q_ref[:, lo:hi]                          # (tq, D) bf16 slice
            kh = k_ref[:, lo:hi]                          # (S,  D) bf16
            vh = v_ref[:, lo:hi]                          # (S,  D) bf16

            # scores = q @ k.T (scale already folded into the Q projection).
            s = lax.dot_general(
                qh, kh, dimension_numbers=(((1,), (1,)), ((), ())),
                preferred_element_type=jnp.float32)       # (tq, S) f32
            if has_mask:
                s = s + mask
            s = s - jnp.max(s, axis=-1, keepdims=True)    # stable softmax
            if use_bf16_exp:
                p = jnp.exp(s.astype(jnp.bfloat16))       # bf16 EUP (v6e/v7x)
            else:
                p = jnp.exp(s)                            # f32 (v5e and older)
            denom = jnp.sum(p, axis=-1, keepdims=True, dtype=jnp.float32)
            pv = jnp.dot(p.astype(jnp.bfloat16), vh,
                         preferred_element_type=jnp.float32)   # (tq, D) f32
            # Normalize the (tq, D) output instead of the (tq, S) probs.
            # TODO(synk): attention dropout skipped (inference / training=False).
            o_acc[:, lo:hi] = pv * pl.reciprocal(denom, approx=True)

        o_ref[...] = o_acc[...].astype(o_ref.dtype)       # one lane-dense store

    return kernel


def pallas_attention(qkv, mask, num_heads, head_dim, use_bf16_exp):
    """qkv: (3, B, T, E) bf16; mask: (1 or B, 1, T, T) additive f32 or None.
    Returns (B, T, E) bf16 with heads already merged (lane-dense)."""
    _, B, T, E = qkv.shape
    D = head_dim
    gd = _head_group_width(E, D)          # 128-lane-aligned head-group width
    n_groups = E // gd
    heads_per_group = gd // D
    tq = _pick_tile(T, 256, 16)
    n_qt = T // tq
    has_mask = mask is not None

    in_specs = [
        pl.BlockSpec((None, None, tq, gd), lambda b, qi, g: (0, b, qi, g)),  # Q
        pl.BlockSpec((None, None, T, gd), lambda b, qi, g: (1, b, 0, g)),    # K
        pl.BlockSpec((None, None, T, gd), lambda b, qi, g: (2, b, 0, g)),    # V
    ]
    args = [qkv, qkv, qkv]
    if has_mask:
        if mask.shape[0] == 1:
            # Batch-invariant mask: constant block index -> stays resident.
            mspec = pl.BlockSpec((None, None, tq, T), lambda b, qi, g: (0, 0, qi, 0))
        else:
            mspec = pl.BlockSpec((None, None, tq, T), lambda b, qi, g: (b, 0, qi, 0))
        in_specs.append(mspec)
        args.append(mask.astype(jnp.float32))

    return pl.pallas_call(
        _make_attn_kernel(heads_per_group, D, has_mask, use_bf16_exp),
        out_shape=jax.ShapeDtypeStruct((B, T, E), jnp.bfloat16),
        grid=(B, n_qt, n_groups),
        in_specs=in_specs,
        out_specs=pl.BlockSpec((None, tq, gd), lambda b, qi, g: (b, qi, g)),
        scratch_shapes=[pltpu.VMEM((tq, gd), jnp.float32)],
        compiler_params=pltpu.CompilerParams(
            dimension_semantics=("parallel", "parallel", "parallel")),
    )(*args)


# ---------------------------------------------------------------------------
# Parameter preparation (done ONCE, outside the per-call path)
# ---------------------------------------------------------------------------
def prepare_clip_params(params, num_heads):
    """Stack / cast the projection weights once and fold the softmax scale
    into the Q projection (weights AND bias, matching scale-on-Q semantics)."""
    E = params["wq"].shape[0]
    D = E // num_heads
    scale = float(D) ** -0.5
    w_qkv = jnp.stack(
        [params["wq"] * scale, params["wk"], params["wv"]], axis=0
    ).astype(jnp.bfloat16)                                   # (3, E, E)
    b_qkv = jnp.stack(
        [params["bq"] * scale, params["bk"], params["bv"]], axis=0
    ).reshape(3, 1, E).astype(jnp.float32)                   # (3, 1, E)
    wo = params["wo"].reshape(1, E, E).astype(jnp.bfloat16)
    bo = params["bo"].reshape(1, 1, E).astype(jnp.float32)
    return {"w_qkv": w_qkv, "b_qkv": b_qkv, "wo": wo, "bo": bo,
            "num_heads": num_heads, "head_dim": D}


# ---------------------------------------------------------------------------
# Module wrapper
# ---------------------------------------------------------------------------
def clip_attention(hidden_states, prepared, attention_mask=None,
                   causal_attention_mask=None, out_dtype=jnp.float32,
                   use_bf16_exp=None):
    if use_bf16_exp is None:
        use_bf16_exp = _bf16_eup_supported()

    B, T, E = hidden_states.shape
    H = prepared["num_heads"]
    D = prepared["head_dim"]

    x2d = hidden_states.reshape(B * T, E).astype(jnp.bfloat16)

    # Fused Q/K/V projection (scale already folded into the Q weights/bias).
    qkv = stacked_linear(x2d, prepared["w_qkv"], prepared["b_qkv"],
                         out_dtype=jnp.bfloat16)             # (3, B*T, E)
    qkv = qkv.reshape(3, B, T, E)                            # free reshape

    # Combined additive mask; kept at batch-dim 1 if batch-invariant.
    mask = None
    if causal_attention_mask is not None:
        mask = causal_attention_mask.astype(jnp.float32)
    if attention_mask is not None:
        am = attention_mask.astype(jnp.float32)
        mask = am if mask is None else mask + am

    attn = pallas_attention(qkv, mask, H, D, use_bf16_exp)   # (B, T, E) bf16

    out = stacked_linear(attn.reshape(B * T, E), prepared["wo"], prepared["bo"],
                         out_dtype=out_dtype)                # (1, B*T, E)
    # TODO(synk): output_attentions=True path (returning attn weights) not implemented.
    return out.reshape(B, T, E)


# ---------------------------------------------------------------------------
# Pure-JAX f32 reference for validation
# ---------------------------------------------------------------------------
def clip_attention_ref(hidden, params, num_heads,
                       attention_mask=None, causal_attention_mask=None):
    B, T, E = hidden.shape
    H = num_heads
    D = E // H
    scale = float(D) ** -0.5

    def lin(x, w, b):
        return x @ w.T + b

    q = lin(hidden, params["wq"], params["bq"]) * scale
    k = lin(hidden, params["wk"], params["bk"])
    v = lin(hidden, params["wv"], params["bv"])

    def shape_heads(t):
        return t.reshape(B, T, H, D).transpose(0, 2, 1, 3)

    q, k, v = shape_heads(q), shape_heads(k), shape_heads(v)
    w = jnp.einsum("bhtd,bhsd->bhts", q, k)
    if causal_attention_mask is not None:
        w = w + causal_attention_mask
    if attention_mask is not None:
        w = w + attention_mask
    p = jax.nn.softmax(w, axis=-1)
    o = jnp.einsum("bhts,bhsd->bhtd", p, v)
    o = o.transpose(0, 2, 1, 3).reshape(B, T, E)
    return lin(o, params["wo"], params["bo"])


# ---------------------------------------------------------------------------
if __name__ == "__main__":
    # Small config consistent with CLIPAttention: hidden=32, heads=4, seq=8, batch=2.
    B, T, E, H = 2, 8, 32, 4

    key = jax.random.PRNGKey(0)
    keys = jax.random.split(key, 10)

    params = {
        "wq": jax.random.normal(keys[0], (E, E), jnp.float32) * 0.02,
        "bq": jax.random.normal(keys[1], (E,), jnp.float32) * 0.02,
        "wk": jax.random.normal(keys[2], (E, E), jnp.float32) * 0.02,
        "bk": jax.random.normal(keys[3], (E,), jnp.float32) * 0.02,
        "wv": jax.random.normal(keys[4], (E, E), jnp.float32) * 0.02,
        "bv": jax.random.normal(keys[5], (E,), jnp.float32) * 0.02,
        "wo": jax.random.normal(keys[6], (E, E), jnp.float32) * 0.02,
        "bo": jax.random.normal(keys[7], (E,), jnp.float32) * 0.02,
    }

    hidden = jax.random.normal(keys[8], (B, T, E), jnp.float32)

    # Batch-invariant causal additive mask (1, 1, T, T): large negative on
    # future positions (exercises the constant-block-index resident-mask path).
    i = jnp.arange(T)[:, None]
    j = jnp.arange(T)[None, :]
    causal = jnp.where(j > i, -1e9, 0.0).astype(jnp.float32)
    causal_mask = causal.reshape(1, 1, T, T)

    prepared = prepare_clip_params(params, H)   # one-time stack/cast/scale-fold

    out = clip_attention(hidden, prepared, causal_attention_mask=causal_mask)
    out = jax.block_until_ready(out)

    ref = clip_attention_ref(hidden, params, H, causal_attention_mask=causal_mask)

    # bf16 MXU inputs (+ possibly bf16 exp on v6e/v7x) -> relaxed tolerance
    # vs. the all-f32 reference.
    np.testing.assert_allclose(np.asarray(out), np.asarray(ref),
                               rtol=3e-2, atol=1.5e-2)
    assert out.shape == (B, T, E)
    print("KERNEL_OK")
</pallas_src>

<mosaic_0001>
module attributes {stable_mosaic.version = 11 : i64} {
  func.func @_linear_kernel_full_k(%arg0: i32, %arg1: i32, %arg2: i32, %arg3: memref<16x32xbf16, #tpu.memory_space<vmem>>, %arg4: memref<1x32x32xbf16, #tpu.memory_space<vmem>>, %arg5: memref<1x1x32xf32, #tpu.memory_space<vmem>>, %arg6: memref<1x16x32xbf16, #tpu.memory_space<vmem>>) attributes {dimension_semantics = [#tpu.dimension_semantics<parallel>, #tpu.dimension_semantics<parallel>, #tpu.dimension_semantics<parallel>], iteration_bounds = array<i64: 3, 1, 1>, scalar_prefetch = 0 : i64, scratch_operands = 0 : i64, tpu.core_type = #tpu.core_type<tc>, window_params = [{transform_indices = @transform_0, window_bounds = array<i64: 16, 32>}, {transform_indices = @transform_1, window_bounds = array<i64: 1, 32, 32>}, {transform_indices = @transform_2, window_bounds = array<i64: 1, 1, 32>}, {transform_indices = @transform_3, window_bounds = array<i64: 1, 16, 32>}]} {
    %c0 = arith.constant 0 : index
    %c0_0 = arith.constant 0 : index
    %0 = vector.load %arg3[%c0, %c0_0] : memref<16x32xbf16, #tpu.memory_space<vmem>>, vector<16x32xbf16>
    %c0_1 = arith.constant 0 : index
    %c0_2 = arith.constant 0 : index
    %c0_3 = arith.constant 0 : index
    %1 = vector.load %arg4[%c0_1, %c0_2, %c0_3] : memref<1x32x32xbf16, #tpu.memory_space<vmem>>, vector<1x32x32xbf16>
    %2 = vector.shape_cast %1 : vector<1x32x32xbf16> to vector<32x32xbf16>
    %cst = arith.constant dense<0.000000e+00> : vector<16x32xf32>
    %3 = tpu.matmul %0, %2, %cst {dimension_numbers = #tpu.dot_dimension_numbers<[1], [1], [0], [0], [0, 0, 1, 0], [], []>} : vector<16x32xbf16>, vector<32x32xbf16>, vector<16x32xf32> -> vector<16x32xf32>
    %c0_4 = arith.constant 0 : index
    %c0_5 = arith.constant 0 : index
    %c0_6 = arith.constant 0 : index
    %4 = vector.load %arg5[%c0_4, %c0_5, %c0_6] : memref<1x1x32xf32, #tpu.memory_space<vmem>>, vector<1x1x32xf32>
    %5 = vector.shape_cast %4 : vector<1x1x32xf32> to vector<1x32xf32>
    %6 = vector.broadcast %5 : vector<1x32xf32> to vector<16x32xf32>
    %7 = arith.addf %3, %6 : vector<16x32xf32>
    %8 = arith.truncf %7 : vector<16x32xf32> to vector<16x32xbf16>
    %c0_7 = arith.constant 0 : index
    %c0_8 = arith.constant 0 : index
    %c0_9 = arith.constant 0 : index
    %9 = vector.load %arg6[%c0_7, %c0_8, %c0_9] : memref<1x16x32xbf16, #tpu.memory_space<vmem>>, vector<1x16x32xbf16>
    %10 = vector.shape_cast %9 : vector<1x16x32xbf16> to vector<16x32xbf16>
    %11 = vector.shape_cast %8 : vector<16x32xbf16> to vector<1x16x32xbf16>
    tpu.vector_store %arg6[%c0_7, %c0_8, %c0_9], %11 {strides = array<i32>} : memref<1x16x32xbf16, #tpu.memory_space<vmem>>, vector<1x16x32xbf16>,
    return
  }
  func.func @transform_0(%arg0: i32, %arg1: i32, %arg2: i32) -> (i32, i32) {
    %c0_i32 = arith.constant 0 : i32
    %c0_i32_0 = arith.constant 0 : i32
    return %arg1, %c0_i32 : i32, i32
  }
  func.func @transform_1(%arg0: i32, %arg1: i32, %arg2: i32) -> (i32, i32, i32) {
    %c0_i32 = arith.constant 0 : i32
    %c0_i32_0 = arith.constant 0 : i32
    return %arg0, %arg2, %c0_i32 : i32, i32, i32
  }
  func.func @transform_2(%arg0: i32, %arg1: i32, %arg2: i32) -> (i32, i32, i32) {
    %c0_i32 = arith.constant 0 : i32
    %c0_i32_0 = arith.constant 0 : i32
    return %arg0, %c0_i32, %arg2 : i32, i32, i32
  }
  func.func @transform_3(%arg0: i32, %arg1: i32, %arg2: i32) -> (i32, i32, i32) {
    %c0_i32 = arith.constant 0 : i32
    return %arg0, %arg1, %arg2 : i32, i32, i32
  }
}

</mosaic_0001>

<bundles_post_ra>
// kernel: tpu_custom_call.1
= control target key start
LH: loop header
LB: loop body
LE: loop exit
PB: predicated region body
PF: predicated region fallthrough
CT: control target
= control target key end

     0   :  { %8 = vsyncpa [#allocation3], 0  ;;  %s1017_s0 = inlined_call_operand.hbm [shape: bf16[16,32], index: 0, kind: input, shape index: {}]   ;;  %s1018_s1 = inlined_call_operand.hbm [shape: bf16[3,32,32], index: 1, kind: input, shape index: {}]   ;;  %s1019_s2 = inlined_call_operand.vmem [shape: f32[3,1,32], index: 2, kind: input, shape index: {}]   ;;  %s1020_s3 = inlined_call_operand.hbm [shape: bf16[3,16,32], index: 3, kind: output, shape index: {}]  }
   0x1   :  { %9 = vsyncpa [#allocation6], 0 }
   0x2   :  { %11 = vsyncpa [#allocation6 + $0x1], 0 }
   0x3   :  { %12 = vsyncpa [#allocation4], 0 }
   0x4   :  { %14 = vsyncpa [#allocation4 + $0x1], 0  ;;  %s788_s12 = smov 0   ;;  %s790_s13 = smov 0  }
   0x5   :  { %s792_s14 = smov 0   ;;  %s794_s15 = smov 0  }
   0x6   :  { %s796_s16 = smov 0   ;;  %s798_s17 = smov 0  }
   0x7 LB: > { %s492_s18 = sadd.s32 4294967295, %s757_s17   ;;  %s493_s19 = sadd.s32 4294967294, %s757_s17   ;;  %s757_s17 = sphi %s798_s17, %s20_s17   ;;  %s753_s16 = sphi %s796_s16, %s1043_s16   ;;  %s749_s15 = sphi %s794_s15, %s1042_s15   ;;  %s745_s14 = sphi %s792_s14, %s1041_s14   ;;  %s741_s13 = sphi %s790_s13, %s1040_s13   ;;  %s737_s12 = sphi %s788_s12, %s1039_s12  }
   0x8   : > { %p87_p0 = scmp.ne.s32.totalorder %s741_s13, %s737_s12  ;;  %p822_p1 = scmp.eq.s32.totalorder %s492_s18, 0 }
   0x9   : > { %p826_p2 = scmp.eq.s32.totalorder %s492_s18, 2  ;;  %p149_p3 = scmp.eq.s32.totalorder %s493_s19, 2 }
   0xa   : > { %s1025_s20 = scalar_select %p822_p1, 1, 0 }
   0xb   : > { %s1026_s21 = scalar_select %p826_p2, 1, 0 }
   0xc   : > { %p832_p4 = por %p822_p1, %p87_p0  ;;  %p494_p5 = scmp.ge.s32.totalorder %s757_s17, 1 }
   0xd   : > { %p837_p6 = por %p149_p3, %p87_p0  ;;  %p156_p7 = scmp.lt.s32.totalorder %s757_s17, 4 }
   0xe   : > { %s1027_s22 = scalar_select %p832_p4, 1, 0 }
   0xf   : > { %s1028_s23 = scalar_select %p837_p6, 1, 0 }
  0x10   : > { %p842_p8 = pnand %p494_p5, %p156_p7  ;;  %s759_s25 = smov [#allocation2]  }
  0x11   : > { %s171_s26 = sshll.u32 %s759_s25, 4  ;;  %s39_s28 = sadd.s32 1, %s753_s16  ;;  %s172_s26 = int_to_ptr.vmem [resolvable:$true] %s171_s26 }
  0x12   : > { %s1029_s24 = scalar_select %p842_p8, 1, 0 }
  0x13   : > { %p539_p9 = pneg %p842_p8  ;;  %s613_s4 = scalar_lea.hbm %s1017_s0, 128 }
  0x14   : > { %p614_p11 = scmp.ne.s32.totalorder %s1017_s0, %s613_s4  ;;  %p620_p3 = scmp.lt.u32.totalorder %s613_s4, %s1017_s0 }
  0x15   : > { %p850_p10 = pnand %p539_p9, %p822_p1 }
  0x17   : > { %p615_p12 = pneg %p850_p10 }
  0x19   : > { %p616_p13 = pnand %p615_p12, %p614_p11 }
  0x1b   : > { %p617_p0 = pneg %p616_p13 }
  0x1d   : > { %p622_p5 = pnand %p620_p3, %p617_p0 }
  0x1f   : > { %625 = shalt.err (!%p622_p5)
}
  0x20   : > { %s626_s9 = scalar_lea.vmem %s172_s26, 128  ;;  %p634_p4 = scmp.lt.s32.totalorder %s172_s26, %s172_s26 }
  0x21   : > { %p627_p7 = scmp.ne.s32.totalorder %s172_s26, %s626_s9  ;;  %p635_p1 = scmp.lt.s32.totalorder %s626_s9, %s626_s9 }
  0x23   : > { %p629_p9 = pnand %p627_p7, %p615_p12  ;;  %p636_p8 = por %p635_p1, %p634_p4 }
  0x25   : > { %p630_p6 = pneg %p629_p9 }
  0x27   : > { %p637_p2 = pnand %p636_p8, %p630_p6 }
  0x29   : > { %640 = shalt.err (!%p637_p2)
}
  0x2a   : > { %s760_s10 = smov 64   ;;  %s761_s11 = smov 4  }
  0x2b   : > { %542 = dma.hbm_to_vmem [thread:$0]  (!%p850_p10), %s1017_s0, 128, %s172_s26, [#allocation3], %s760_s10, %s760_s10, %s761_s11  }
  0x2c   : > { %p41_p1 = scmp.ge.s32.totalorder %s39_s28, 3  ;;  %s74_s25 = sadd.s32 1, %s745_s14 }
  0x2d   : > { %p81_p2 = scmp.ne.s32.totalorder %s745_s14, %s741_s13  ;;  %p82_p4 = scmp.eq.s32.totalorder %s757_s17, 0 }
  0x2e   : > { %s1045_s28 = smov (%p41_p1, %s39_s28), 0  ;;  %p1032_p8 = scmp.ne.s32.totalorder %s1026_s21, 0 }
  0x2f   : > { %p880_p6 = por %p82_p4, %p81_p2  ;;  %s69_s30 = ssub.s32 %s753_s16, %s1045_s28 }
  0x30   : > { %p886_p11 = por %p1032_p8, %p81_p2  ;;  %p552_p12 = scmp.lt.s32.totalorder %s757_s17, 3 }
  0x31   : > { %p72_p10 = scmp.eq.s32.totalorder %s69_s30, 0  ;;  %s185_s26 = sand.u32 1, %s745_s14  }
  0x32   : > { %s497_s4 = sshll.u32 %s185_s26, 4  ;;  %s516_s6 = sshll.u32 %s753_s16, 8 }
  0x33   : > { %s895_s5 = scalar_select %p72_p10, %s745_s14, %s74_s25  }
  0x34   : > { %s901_s9 = scalar_lea.hbm %s1018_s1, %s516_s6  ;;  %s189_s21 = scalar_lea.vmem [#allocation5], %s497_s4 }
  0x35   : > { %s198_s18 = sshll.u32 %s189_s21, 4  ;;  %p907_p13 = pnand %p552_p12, %p880_p6  ;;  %s903_s18 = int_to_ptr.vmem [resolvable:$true] %s198_s18 }
  0x36   : > { %s911_s25 = scalar_lea.sflag [#allocation6], %s185_s26  ;;  %s641_s30 = scalar_lea.hbm %s901_s9, 256 }
  0x37   : > { %p642_p0 = scmp.ne.s32.totalorder %s901_s9, %s641_s30  ;;  %p643_p3 = pneg %p907_p13 }
  0x38   : > { %s646_s29 = scalar_lea.hbm %s1018_s1, 768  ;;  %p647_p9 = scmp.lt.u32.totalorder %s901_s9, %s1018_s1 }
  0x39   : > { %p644_p5 = pnand %p643_p3, %p642_p0  ;;  %p648_p1 = scmp.lt.u32.totalorder %s646_s29, %s641_s30 }
  0x3a   : > { %p650_p4 = scmp.lt.u32.totalorder %s641_s30, %s901_s9 }
  0x3b   : > { %p645_p7 = pneg %p644_p5  ;;  %p649_p2 = por %p648_p1, %p647_p9 }
  0x3d   : > { %p651_p6 = por %p650_p4, %p649_p2 }
  0x3f   : > { %p652_p8 = pnand %p651_p6, %p645_p7 }
  0x41   : > { %655 = shalt.err (!%p652_p8)
}
  0x42   : > { %s656_s26 = scalar_lea.vmem %s903_s18, 256  ;;  %s762_s21 = smov [#allocation5]  }
  0x43   : > { %p657_p12 = scmp.ne.s32.totalorder %s903_s18, %s656_s26  ;;  %s661_s4 = sshll.u32 %s762_s21, 4  ;;  %s662_s4 = int_to_ptr.vmem [resolvable:$false] %s661_s4 }
  0x44   : > { %s663_s6 = scalar_lea.vmem %s662_s4, 512  ;;  %p664_p5 = scmp.lt.s32.totalorder %s903_s18, %s662_s4 }
  0x45   : > { %p659_p10 = pnand %p657_p12, %p643_p3  ;;  %p665_p9 = scmp.lt.s32.totalorder %s663_s6, %s656_s26 }
  0x47   : > { %p660_p0 = pneg %p659_p10  ;;  %p666_p1 = por %p665_p9, %p664_p5 }
  0x49   : > { %p667_p2 = pnand %p666_p1, %p660_p0 }
  0x4b   : > { %670 = shalt.err (!%p667_p2)
}
  0x4c   : > { %546 = dma.hbm_to_vmem [thread:$0]  (!%p907_p13), %s901_s9, 256, %s903_s18, %s911_s25, %s760_s10, %s760_s10, %s761_s11  }
  0x4d   : > { %p1035_p3 = scmp.ne.s32.totalorder %s1029_s24, 0 }
  0x4e   : > { %p1036_p7 = scmp.ne.s32.totalorder (!%p1035_p3), %s1025_s20, 0 }
  0x4f   : > { %219 = sbr.rel (%p1035_p3) target bundleno = 341 (0x155), region = 32 }
  0x56   : > { %724 = dma.done.wait (%p1036_p7), [#allocation3], 128  }
  0x57   : > { %726 = vsyncadd (%p1036_p7), [#allocation3], 4294967168  ;;  %s949_s30 = sand.u32 1, %s741_s13   ;;  %p1037_p4 = scmp.ne.s32.totalorder %s1027_s22, 0 }
  0x58   : > { %s502_s19 = sshll.u32 %s949_s30, 4  ;;  %s226_s29 = scalar_lea.sflag [#allocation6], %s949_s30 }
  0x59   : > { %s229_s7 = scalar_lea.vmem [#allocation5], %s502_s19 }
  0x5a   : > { %728 = dma.done.wait (%p1037_p4), %s226_s29, 256  }
  0x5b   : > { %730 = vsyncadd (%p1037_p4), %s226_s29, 4294967040  ;;  %v763_v0 = vmov 0.0   ;;  %vm764_vm0 = vmmov 0   ;;  %vm296_vm1 = vcmask 261120   ;;  %v610_v1 = vld [vmem:[%s229_s7] sm:$0xff]   ;;  %v611_v3 = vld [vmem:[%s229_s7 + $0x8] sm:$0xff]  }
  0x5c   : > { %523 = vmatprep.subr.bf16.mxu0 %v763_v0  ;;  %527 = vmatprep.mubr.msk.bf16.mxu0 %vm764_vm0, %v763_v0  ;;  %v301_v2 = vsel %vm296_vm1, %v610_v1, 0  ;;  %v304_v4 = vsel %vm296_vm1, %v611_v3, 0  ;;  %v612_v5 = vld [vmem:[#allocation2] sm:$0xff]   ;;  %p260_p13 = scmp.lt.s32.totalorder %s749_s15, 2  ;;  %s503_s22 = sshll.u32 %s949_s30, 3  ;;  %vm355_vm2 = vcmask 257024  }
  0x5d   : > { %524 = vmatpush3.bf16.xpose.msra.mxu0 %v301_v2  ;;  %s257_s9 = scalar_lea.vmem [#allocation7], %s503_s22  ;;  %s519_s25 = sshll.u32 %s749_s15, 7 }
  0x5e   : > { %525 = vmatprep.subr.bf16.mxu0 %v763_v0  ;;  %s261_s20 = scalar_select %p260_p13, %s749_s15, 2 }
  0x5f   : > { %s375_s18 = sshll.u32 %s257_s9, 4  ;;  %s967_s21 = scalar_lea.hbm %s1020_s3, %s519_s25  ;;  %s969_s18 = int_to_ptr.vmem [resolvable:$true] %s375_s18 }
  0x60   : > { %s265_s11 = scalar_lea.vmem %s1019_s2, %s261_s20  ;;  %s359_s4 = scalar_lea.sflag [#allocation4], %s949_s30 }
  0x61   : > { %v504_v6 = vld [vmem:[%s265_s11] ss:$0 sm:$0xff]  ;;  %s671_s15 = scalar_lea.vmem %s969_s18, 128  ;;  %s765_s6 = smov [#allocation7]  }
  0x62   : > { %p672_p6 = scmp.ne.s32.totalorder %s969_s18, %s671_s15  ;;  %s675_s19 = sshll.u32 %s765_s6, 4  ;;  %s676_s19 = int_to_ptr.vmem [resolvable:$false] %s675_s19 }
  0x63   : > { %s677_s29 = scalar_lea.vmem %s676_s19, 256  ;;  %p678_p10 = scmp.lt.s32.totalorder %s969_s18, %s676_s19 }
  0x64   : > { %p673_p8 = pnand %p672_p6, %p886_p11  ;;  %p679_p0 = scmp.lt.s32.totalorder %s677_s29, %s671_s15 }
  0x65   : > { %526 = vmatpush3.bf16.xpose.msra.mxu0 %v304_v4 }
  0x66   : > { %p674_p12 = pneg %p673_p8  ;;  %p680_p5 = por %p679_p0, %p678_p10 }
  0x68   : > { %p681_p9 = pnand %p680_p5, %p674_p12 }
  0x6c   : > { %528 = vmatmul.mubr.msk.bf16.vlgmr.msra.gmra.mrb[0].mxu0 %vm296_vm1, %v612_v5 }
 0x13f   : > { %v340_v7 = vpop.f32.mrb[0].mxu0 }
 0x140   : > { %v341_v8 = vadd.f32 %v504_v6, %v340_v7  ;;  %v529_v9 = vpop.f32.mrb[1].mxu0 }
 0x141   : > { %v343_v10 = vpop.f32.mrb[2].mxu0 }
 0x142   : > { %v517_v11 = vpack.c.bf16 %v341_v8, %v341_v8  ;;  %v344_v12 = vadd.f32 %v504_v6, %v343_v10  ;;  %v530_v13 = vpop.f32.mrb[3].mxu0 }
 0x144   : > { %356 = vst.msk [vmem:[%s257_s9] sm:$0xf] %vm355_vm2, %v517_v11  ;;  %v518_v14 = vpack.c.bf16 %v344_v12, %v344_v12 }
 0x146   : > { %357 = vst.msk [vmem:[%s257_s9 + $0x4] sm:$0xf] %vm355_vm2, %v518_v14 }
 0x147   : > { %684 = shalt.err (!%p681_p9)
}
 0x148   : > { %s685_s7 = scalar_lea.hbm %s967_s21, 128  ;;  %s689_s24 = scalar_lea.hbm %s1020_s3, 384 }
 0x149   : > { %p686_p1 = scmp.ne.s32.totalorder %s967_s21, %s685_s7  ;;  %p690_p7 = scmp.lt.u32.totalorder %s967_s21, %s1020_s3 }
 0x14a   : > { %p691_p4 = scmp.lt.u32.totalorder %s689_s24, %s685_s7  ;;  %p693_p6 = scmp.lt.u32.totalorder %s685_s7, %s967_s21 }
 0x14b   : > { %p687_p2 = pnand %p686_p1, %p886_p11 }
 0x14c   : > { %p692_p13 = por %p691_p4, %p690_p7 }
 0x14d   : > { %p688_p3 = pneg %p687_p2 }
 0x14e   : > { %p694_p8 = por %p693_p6, %p692_p13 }
 0x150   : > { %p695_p12 = pnand %p694_p8, %p688_p3 }
 0x152   : > { %698 = shalt.err (!%p695_p12)
}
 0x153   : > { %s766_s9 = smov 64   ;;  %s767_s25 = smov 4  }
 0x154   : > { %537 = dma.vmem_to_hbm [thread:$0]  (%p886_p11), %s969_s18, 128, %s967_s21, %s359_s4, %s766_s9, %s766_s9, %s767_s25  }
 0x155 PF: > { %p554_p10 = scmp.ge.s32.totalorder %s757_s17, 2  ;;  %s390_s8 = sand.u32 1, %s737_s12  }
 0x156   : > { %p1038_p0 = scmp.ne.s32.totalorder %s1028_s23, 0  ;;  %s391_s26 = scalar_lea.sflag [#allocation4], %s390_s8 }
 0x158   : > { %p548_p5 = pnand %p554_p10, %p1038_p0 }
 0x15a   : > { %732 = dma.done.wait (!%p548_p5), %s391_s26, 128  }
 0x15b   : > { %734 = vsyncadd (!%p548_p5), %s391_s26, 4294967168  ;;  %s20_s17 = sadd.s32 1, %s757_s17   ;;  %s1039_s12 = smov %s741_s13 }
 0x15c   : > { %p17_p9 = scmp.ge.s32.totalorder %s20_s17, 5   ;;  %s1040_s13 = smov %s745_s14 }
 0x15d   : > { %s1041_s14 = smov %s895_s5  ;;  %s1042_s15 = smov %s753_s16 }
 0x15e   : > { %s1043_s16 = smov %s1045_s28  ;;  %19 = sbr.rel (!%p17_p9) target bundleno = 7 (0x7), region = 86 }
 0x165   :  { %396 = vsyncpa [#allocation3], 1 }
 0x166   :  { %398 = vsyncpa [#allocation3 + $0x1], 1 }
 0x167   :  { %399 = vsyncpa [#allocation6], 1 }
 0x168   :  { %401 = vsyncpa [#allocation6 + $0x1], 1 }
 0x169   :  { %402 = vsyncpa [#allocation4], 1 }
 0x16a   :  { %404 = vsyncpa [#allocation4 + $0x1], 1 }

</bundles_post_ra>
